<compile_context>
chip_gen: v6e
topology: v6e:2x2x1
jax: 0.10.0
libtpu: 0.0.40
codegen_flags: <defaults>
</compile_context>

<pallas_src>
import functools

import jax
import jax.numpy as jnp
from jax import lax
from jax.experimental import pallas as pl
from jax.experimental.pallas import tpu as pltpu


# -----------------------------------------------------------------------------
# Fused kernel: one parallel pass over row tiles of the flattened (B*S, .) slabs
#   scenarios = noise @ Wd_n + ctx @ W_ctx + (carry_c + b_fused)   [per row]
# -----------------------------------------------------------------------------
def _scenario_kernel(noise_ref, ctx_ref, hb_ref, wdn_ref, wctx_ref, out_ref):
    acc = jnp.dot(noise_ref[...], wdn_ref[...],
                  preferred_element_type=jnp.float32)
    acc = acc + jnp.dot(ctx_ref[...], wctx_ref[...],
                        preferred_element_type=jnp.float32)
    out_ref[...] = (acc + hb_ref[...]).astype(out_ref.dtype)


def _pick_row_tile(bs, nf, h, max_tile=2048, stream_budget=8 * 1024 * 1024):
    """Row tile for the fused pass.

    - cdiv grid: tm need not divide bs (Pallas masks the ragged last block).
    - >= 2 grid steps whenever possible so ("parallel",) can shard across the
      two TensorCores on v7x (no effect on single-TC v5e/v6e).
    - capped by max_tile and by a conservative double-buffered streamed-bytes
      budget so scaled-up NF (production: 256*32=8192) stays under the default
      scoped-VMEM limit on every generation (v7x: 64 MiB physical).  If NF/BS
      are scaled up further, also set vmem_limit_bytes explicitly.
    """
    if bs <= 8:
        return bs
    # bytes streamed per row: noise bf16, ctx bf16, hb f32, out f32 (x2 buffers)
    per_row = 2 * (2 * nf + 2 * h + 4 * h + 4 * h)
    cap = max(8, (stream_budget // per_row) // 8 * 8)
    half = (((bs + 1) // 2) + 7) // 8 * 8          # ceil(bs/2) rounded to 8
    return max(8, min(max_tile, cap, half, bs))


# -----------------------------------------------------------------------------
# Forward (jitted core): returns scenarios and metadata as stacked arrays
# -----------------------------------------------------------------------------
@functools.partial(jax.jit, static_argnames=("scan_size",))
def _forward_impl(noise_patterns, context_states, importance_values, params, *,
                  scan_size):
    del importance_values  # carried by the reference module but never used in compute
    B, S, L, I = noise_patterns.shape
    H = context_states.shape[-1]
    NF = L * I
    assert S % scan_size == 0, "demo assumes seq_len divisible by scan_size"
    C = S // scan_size
    T = scan_size
    BS = B * S

    f32, bf16 = jnp.float32, jnp.bfloat16
    noise3 = noise_patterns.reshape(B, S, NF).astype(f32)
    ctx3 = context_states.astype(f32)

    # --- fold encoder into decoder (once, f32) -------------------------------
    w_enc_t = params["w_enc"].astype(f32).T                 # (H, L)
    w_dec_t = params["w_dec"].astype(f32).T                 # (NF+L+H, H)
    wd_n = w_dec_t[:NF]                                     # (NF, H)
    wd_c = w_dec_t[NF:NF + L]                               # (L,  H)
    wd_h = w_dec_t[NF + L:]                                 # (H,  H)
    w_ctx = w_enc_t @ wd_c                                  # (H, H)  fused encoder
    b_fused = params["b_enc"].astype(f32) @ wd_c + params["b_dec"].astype(f32)  # (H,)

    # --- bf16 streaming operands (f32 accumulation everywhere) ---------------
    noise2d = noise3.reshape(BS, NF).astype(bf16)
    ctx2d = ctx3.reshape(BS, H).astype(bf16)
    wd_n_b = wd_n.astype(bf16)
    w_ctx_b = w_ctx.astype(bf16)

    # --- carry recurrence from chunk-END rows only (tiny, off the heavy path) -
    noise_end = noise3[:, T - 1::T].astype(bf16)            # (B, C, NF)
    ctx_end = ctx3[:, T - 1::T].astype(bf16)                # (B, C, H)
    base_end = (jnp.einsum("bcf,fh->bch", noise_end, wd_n_b,
                           preferred_element_type=f32)
                + jnp.einsum("bch,hk->bck", ctx_end, w_ctx_b,
                             preferred_element_type=f32)
                + b_fused)                                   # (B, C, H)

    def carry_step(h, be):
        # h: additive carry term for the CURRENT chunk; be: base_end of that chunk
        h_next = jnp.dot(be + h, wd_h, preferred_element_type=f32)
        return h_next, h

    _, h_all = lax.scan(carry_step, jnp.zeros((B, H), f32),
                        jnp.swapaxes(base_end, 0, 1))
    h_all = jnp.swapaxes(h_all, 0, 1)                        # (B, C, H)

    # per-row additive term = carry_c + fused bias, expanded to (BS, H) f32
    hb_rows = (h_all[:, :, None, :] + b_fused).astype(f32)   # (B, C, 1, H)
    hb_rows = jnp.broadcast_to(hb_rows, (B, C, T, H)).reshape(BS, H)

    # --- single fused, fully parallel pass ------------------------------------
    tm = _pick_row_tile(BS, NF, H)
    scenarios2d = pl.pallas_call(
        _scenario_kernel,
        out_shape=jax.ShapeDtypeStruct((BS, H), f32),
        grid_spec=pltpu.PrefetchScalarGridSpec(
            num_scalar_prefetch=0,
            grid=(pl.cdiv(BS, tm),),
            in_specs=[
                pl.BlockSpec((tm, NF), lambda r: (r, 0)),    # noise rows (bf16)
                pl.BlockSpec((tm, H), lambda r: (r, 0)),     # ctx rows   (bf16)
                pl.BlockSpec((tm, H), lambda r: (r, 0)),     # carry+bias (f32)
                pl.BlockSpec((NF, H), lambda r: (0, 0)),     # Wd_n  (resident)
                pl.BlockSpec((H, H), lambda r: (0, 0)),      # W_ctx (resident)
            ],
            out_specs=pl.BlockSpec((tm, H), lambda r: (r, 0)),
        ),
        compiler_params=pltpu.CompilerParams(
            dimension_semantics=("parallel",)),              # independent rows
    )(noise2d, ctx2d, hb_rows, wd_n_b, w_ctx_b)

    scenarios = scenarios2d.reshape(B, S, H)

    # --- metadata: one vectorized pass, returned as stacked (C,) arrays ------
    # (torch.std is unbiased -> ddof=1; needs scan_size >= 2, same as PyTorch)
    s4 = scenarios.reshape(B, C, T, H)
    complexity = jnp.mean(jnp.linalg.norm(s4, axis=-1), axis=(0, 2))         # (C,)
    diffs = s4[:, :, 1:] - s4[:, :, :-1]
    coherence = -jnp.mean(jnp.linalg.norm(diffs, axis=-1), axis=(0, 2))      # (C,)
    novelty = jnp.mean(jnp.std(s4, axis=2, ddof=1), axis=(0, 2))             # (C,)
    metadata = {"complexity": complexity, "coherence": coherence, "novelty": novelty}
    return scenarios, metadata


def scenario_generator_forward(noise_patterns, context_states, importance_values,
                               params, *, scan_size):
    """API-parity wrapper: returns (scenarios, List[Dict]) like the PyTorch module."""
    scenarios, md = _forward_impl(noise_patterns, context_states, importance_values,
                                  params, scan_size=scan_size)
    num_chunks = int(md["complexity"].shape[0])
    metadata_list = [
        {k: md[k][c] for k in ("complexity", "coherence", "novelty")}
        for c in range(num_chunks)
    ]
    return scenarios, metadata_list


# -----------------------------------------------------------------------------
# Pure-f32 JAX reference (mirrors the PyTorch chunk loop) for verification
# -----------------------------------------------------------------------------
def _reference_forward(noise_patterns, context_states, params, scan_size):
    B, S = context_states.shape[:2]
    H = context_states.shape[-1]
    ctx_enc = context_states @ params["w_enc"].T + params["b_enc"]
    noise_flat = noise_patterns.reshape(B, S, -1)
    carry = jnp.zeros((B, H), jnp.float32)
    outs = []
    for c in range(S // scan_size):
        s, e = c * scan_size, (c + 1) * scan_size
        carry_b = jnp.broadcast_to(carry[:, None, :], (B, scan_size, H))
        combined = jnp.concatenate(
            [noise_flat[:, s:e], ctx_enc[:, s:e], carry_b], axis=-1)
        scen = combined @ params["w_dec"].T + params["b_dec"]
        carry = scen[:, -1]
        outs.append(scen)
    return jnp.concatenate(outs, axis=1)


# -----------------------------------------------------------------------------
if __name__ == "__main__":
    # Small ISSConfig-consistent sizes
    hidden_size, latent_dim, importance_dim = 32, 16, 8
    batch, seq_len, scan_size = 2, 16, 8
    combined_dim = latent_dim * importance_dim + latent_dim + hidden_size  # 176

    key = jax.random.PRNGKey(0)
    k1, k2, k3, k4, k5, k6, k7 = jax.random.split(key, 7)

    # Deterministic parameter init (PyTorch Linear-style uniform)
    k_enc = 1.0 / jnp.sqrt(jnp.float32(hidden_size))
    k_dec = 1.0 / jnp.sqrt(jnp.float32(combined_dim))
    params = {
        "w_enc": jax.random.uniform(k1, (latent_dim, hidden_size),
                                    jnp.float32, -k_enc, k_enc),
        "b_enc": jax.random.uniform(k2, (latent_dim,), jnp.float32, -k_enc, k_enc),
        "w_dec": jax.random.uniform(k3, (hidden_size, combined_dim),
                                    jnp.float32, -k_dec, k_dec),
        "b_dec": jax.random.uniform(k4, (hidden_size,), jnp.float32, -k_dec, k_dec),
    }

    noise_patterns = jax.random.normal(
        k5, (batch, seq_len, latent_dim, importance_dim), jnp.float32)
    context_states = jax.random.normal(
        k6, (batch, seq_len, hidden_size), jnp.float32)
    importance_values = jax.random.normal(
        k7, (batch, seq_len, importance_dim), jnp.float32)

    scenarios, metadata_list = scenario_generator_forward(
        noise_patterns, context_states, importance_values, params,
        scan_size=scan_size)
    scenarios = jax.block_until_ready(scenarios)

    ref = _reference_forward(noise_patterns, context_states, params, scan_size)
    assert scenarios.shape == (batch, seq_len, hidden_size)
    # bf16 operand streaming + encoder/decoder fusion reassociation -> ~1e-3
    # level diffs vs the pure-f32 reference; 2e-2 tolerance leaves wide margin
    # while still catching any structural (carry/indexing) bug (~1e-1 scale).
    assert jnp.allclose(scenarios, ref, atol=2e-2, rtol=2e-2), "mismatch vs reference"

    assert len(metadata_list) == seq_len // scan_size
    for md in metadata_list:
        for k in ("complexity", "coherence", "novelty"):
            assert md[k].shape == ()
            assert bool(jnp.isfinite(md[k]))
    _ = jax.block_until_ready(metadata_list[0]["complexity"])

    print("KERNEL_OK")
</pallas_src>

<mosaic_0001>
module attributes {stable_mosaic.version = 11 : i64} {
  func.func @_scenario_kernel(%arg0: i32, %arg1: memref<16x128xbf16, #tpu.memory_space<vmem>>, %arg2: memref<16x32xbf16, #tpu.memory_space<vmem>>, %arg3: memref<16x32xf32, #tpu.memory_space<vmem>>, %arg4: memref<128x32xbf16, #tpu.memory_space<vmem>>, %arg5: memref<32x32xbf16, #tpu.memory_space<vmem>>, %arg6: memref<16x32xf32, #tpu.memory_space<vmem>>) attributes {dimension_semantics = [#tpu.dimension_semantics<parallel>], iteration_bounds = array<i64: 2>, scalar_prefetch = 0 : i64, scratch_operands = 0 : i64, tpu.core_type = #tpu.core_type<tc>, window_params = [{transform_indices = @transform_0, window_bounds = array<i64: 16, 128>}, {transform_indices = @transform_1, window_bounds = array<i64: 16, 32>}, {transform_indices = @transform_2, window_bounds = array<i64: 16, 32>}, {pipeline_mode = #tpu.pipeline_mode<synchronous>, transform_indices = @transform_3, window_bounds = array<i64: 128, 32>}, {pipeline_mode = #tpu.pipeline_mode<synchronous>, transform_indices = @transform_4, window_bounds = array<i64: 32, 32>}, {transform_indices = @transform_5, window_bounds = array<i64: 16, 32>}]} {
    %c0 = arith.constant 0 : index
    %c0_0 = arith.constant 0 : index
    %0 = vector.load %arg1[%c0, %c0_0] : memref<16x128xbf16, #tpu.memory_space<vmem>>, vector<16x128xbf16>
    %c0_1 = arith.constant 0 : index
    %c0_2 = arith.constant 0 : index
    %1 = vector.load %arg4[%c0_1, %c0_2] : memref<128x32xbf16, #tpu.memory_space<vmem>>, vector<128x32xbf16>
    %cst = arith.constant dense<0.000000e+00> : vector<16x32xf32>
    %2 = tpu.matmul %0, %1, %cst {dimension_numbers = #tpu.dot_dimension_numbers<[1], [0], [0], [1], [0, 0, 1, 1], [], []>} : vector<16x128xbf16>, vector<128x32xbf16>, vector<16x32xf32> -> vector<16x32xf32>
    %c0_3 = arith.constant 0 : index
    %c0_4 = arith.constant 0 : index
    %3 = vector.load %arg2[%c0_3, %c0_4] : memref<16x32xbf16, #tpu.memory_space<vmem>>, vector<16x32xbf16>
    %c0_5 = arith.constant 0 : index
    %c0_6 = arith.constant 0 : index
    %4 = vector.load %arg5[%c0_5, %c0_6] : memref<32x32xbf16, #tpu.memory_space<vmem>>, vector<32x32xbf16>
    %cst_7 = arith.constant dense<0.000000e+00> : vector<16x32xf32>
    %5 = tpu.matmul %3, %4, %cst_7 {dimension_numbers = #tpu.dot_dimension_numbers<[1], [0], [0], [1], [0, 0, 1, 1], [], []>} : vector<16x32xbf16>, vector<32x32xbf16>, vector<16x32xf32> -> vector<16x32xf32>
    %6 = arith.addf %2, %5 : vector<16x32xf32>
    %c0_8 = arith.constant 0 : index
    %c0_9 = arith.constant 0 : index
    %7 = vector.load %arg3[%c0_8, %c0_9] : memref<16x32xf32, #tpu.memory_space<vmem>>, vector<16x32xf32>
    %8 = arith.addf %6, %7 : vector<16x32xf32>
    %c0_10 = arith.constant 0 : index
    %c0_11 = arith.constant 0 : index
    %9 = vector.load %arg6[%c0_10, %c0_11] : memref<16x32xf32, #tpu.memory_space<vmem>>, vector<16x32xf32>
    tpu.vector_store %arg6[%c0_10, %c0_11], %8 {strides = array<i32>} : memref<16x32xf32, #tpu.memory_space<vmem>>, vector<16x32xf32>,
    return
  }
  func.func @transform_0(%arg0: i32) -> (i32, i32) {
    %c0_i32 = arith.constant 0 : i32
    %c0_i32_0 = arith.constant 0 : i32
    return %arg0, %c0_i32 : i32, i32
  }
  func.func @transform_1(%arg0: i32) -> (i32, i32) {
    %c0_i32 = arith.constant 0 : i32
    %c0_i32_0 = arith.constant 0 : i32
    return %arg0, %c0_i32 : i32, i32
  }
  func.func @transform_2(%arg0: i32) -> (i32, i32) {
    %c0_i32 = arith.constant 0 : i32
    %c0_i32_0 = arith.constant 0 : i32
    return %arg0, %c0_i32 : i32, i32
  }
  func.func @transform_3(%arg0: i32) -> (i32, i32) {
    %c0_i32 = arith.constant 0 : i32
    %c0_i32_0 = arith.constant 0 : i32
    %c0_i32_1 = arith.constant 0 : i32
    return %c0_i32, %c0_i32_0 : i32, i32
  }
  func.func @transform_4(%arg0: i32) -> (i32, i32) {
    %c0_i32 = arith.constant 0 : i32
    %c0_i32_0 = arith.constant 0 : i32
    %c0_i32_1 = arith.constant 0 : i32
    return %c0_i32, %c0_i32_0 : i32, i32
  }
  func.func @transform_5(%arg0: i32) -> (i32, i32) {
    %c0_i32 = arith.constant 0 : i32
    %c0_i32_0 = arith.constant 0 : i32
    return %arg0, %c0_i32 : i32, i32
  }
}

</mosaic_0001>

<bundles_post_ra>
// kernel: custom-call
= control target key start
LH: loop header
LB: loop body
LE: loop exit
PB: predicated region body
PF: predicated region fallthrough
CT: control target
= control target key end

     0   :  { %s6_s0 = inlined_call_operand.vmem [shape: f32[2,2,32], index: 0, kind: output, shape index: {}]  }

// kernel: _forward_impl.1
= control target key start
LH: loop header
LB: loop body
LE: loop exit
PB: predicated region body
PF: predicated region fallthrough
CT: control target
= control target key end

     0   :  { %s670_s18 = smov 0   ;;  %s730_s0 = inlined_call_operand.vmem [shape: bf16[32,128], index: 0, kind: input, shape index: {}]   ;;  %s731_s1 = inlined_call_operand.vmem [shape: bf16[32,32], index: 1, kind: input, shape index: {}]   ;;  %s732_s2 = inlined_call_operand.vmem [shape: f32[32,32], index: 2, kind: input, shape index: {}]   ;;  %s733_s3 = inlined_call_operand.vmem [shape: bf16[128,32], index: 3, kind: input, shape index: {}]   ;;  %s734_s4 = inlined_call_operand.vmem [shape: bf16[32,32], index: 4, kind: input, shape index: {}]   ;;  %s735_s5 = inlined_call_operand.vmem [shape: f32[32,32], index: 5, kind: output, shape index: {}]  }
   0x1 LB: > { %s540_s19 = sadd.s32 4294967295, %s636_s18   ;;  %p544_p0 = scmp.ge.s32.totalorder %s636_s18, 1  ;;  %s636_s18 = sphi %s670_s18, %s15_s18  }
   0x2   : > { %p210_p1 = scmp.lt.s32.totalorder %s636_s18, 3 }
   0x4   : > { %p211_p2 = pnand %p544_p0, %p210_p1 }
   0x5   : > { %s545_s24 = sshll.u32 (!%p211_p2), %s540_s19, 1 }
   0x6   : > { %214 = sbr.rel (%p211_p2) target bundleno = 246 (0xf6), region = 40  ;;  %p249_p3 = scmp.lt.s32.totalorder (!%p211_p2), %s545_s24, 3 }
   0xb   : > { %v618_v0 = vld [vmem:[%s733_s3 + $0x38] sm:$0xff]   ;;  %v638_v1 = vmov 0.0   ;;  %v619_v2 = vld [vmem:[%s733_s3 + $0x30] sm:$0xff]   ;;  %vm639_vm0 = vmmov 0   ;;  %v623_v3 = vld [vmem:[%s734_s4 + $0x8] sm:$0xff]   ;;  %s737_s24 = smov (!%p249_p3, %s545_s24), 3 }
   0xc   : > { %588 = vmatprep.subr.bf16.mxu1 %v638_v1  ;;  %580 = vmatprep.subr.bf16.mxu0 %v638_v1  ;;  %v620_v4 = vld [vmem:[%s733_s3 + $0x28] sm:$0xff]   ;;  %v625_v5 = vld [vmem:[%s734_s4] sm:$0xff]   ;;  %s546_s6 = sshll.u32 %s737_s24, 2  ;;  %vm314_vm1 = vcmask 261120   ;;  %v622_v8 = vld [vmem:[%s733_s3 + $0x18] sm:$0xff]   ;;  %s550_s25 = sshll.u32 %s737_s24, 3 }
   0xd   : > { %589 = vmatpush3.bf16.msra.mxu1 %v618_v0  ;;  %584 = vmatprep.mubr.msk.bf16.mxu0 %vm639_vm0, %v638_v1  ;;  %s258_s9 = scalar_lea.vmem %s731_s1, %s546_s6  ;;  %v621_v6 = vld [vmem:[%s733_s3 + $0x20] sm:$0xff]   ;;  %s252_s14 = scalar_lea.vmem %s730_s0, %s546_s6  ;;  %v624_v9 = vld [vmem:[%s733_s3 + $0x10] sm:$0xff]   ;;  %v626_v10 = vld [vmem:[%s733_s3 + $0x8] sm:$0xff]  }
   0xe   : > { %590 = vmatprep.subr.bf16.mxu1 %v638_v1  ;;  %604 = vmatprep.mubr.msk.bf16.mxu1 %vm639_vm0, %v638_v1  ;;  %v627_v7 = vld [vmem:[%s258_s9] sm:$0xff]   ;;  %s264_s28 = scalar_lea.vmem %s732_s2, %s550_s25  ;;  %s270_s6 = scalar_lea.vmem %s735_s5, %s550_s25 }
   0xf   : > { %581 = vmatpush3.bf16.msra.mxu0 %v623_v3  ;;  %v628_v11 = vld [vmem:[%s733_s3] sm:$0xff]   ;;  %v455_v23 = vld [vmem:[%s264_s28 + $0x8] sm:$0xff] }
  0x10   : > { %582 = vmatprep.subr.bf16.mxu0 %v638_v1  ;;  %v629_v12 = vld [vmem:[%s252_s14] sm:$0xff]  }
  0x11   : > { %591 = vmatpush3.bf16.msra.mxu1 %v619_v2  ;;  %v454_v18 = vld [vmem:[%s264_s28] sm:$0xff] }
  0x12   : > { %592 = vmatprep.subr.bf16.mxu1 %v638_v1 }
  0x13   : > { %583 = vmatpush3.bf16.msra.mxu0 %v625_v5 }
  0x15   : > { %593 = vmatpush3.bf16.msra.mxu1 %v620_v4 }
  0x16   : > { %594 = vmatprep.subr.bf16.mxu1 %v638_v1  ;;  %585 = vmatmul.mubr.msk.bf16.vlgmr.msra.gmra.mxu0 %vm314_vm1, %v627_v7 }
  0x19   : > { %595 = vmatpush3.bf16.msra.mxu1 %v621_v6 }
  0x1a   : > { %596 = vmatprep.subr.bf16.mxu1 %v638_v1 }
  0x1d   : > { %597 = vmatpush3.bf16.msra.mxu1 %v622_v8 }
  0x1e   : > { %598 = vmatprep.subr.bf16.mxu1 %v638_v1 }
  0x21   : > { %599 = vmatpush3.bf16.msra.mxu1 %v624_v9 }
  0x22   : > { %600 = vmatprep.subr.bf16.mxu1 %v638_v1 }
  0x25   : > { %601 = vmatpush3.bf16.msra.mxu1 %v626_v10 }
  0x26   : > { %602 = vmatprep.subr.bf16.mxu1 %v638_v1 }
  0x29   : > { %603 = vmatpush3.bf16.msra.mxu1 %v628_v11 }
  0x2c   : > { %605 = vmatmul.mubr.bf16.vlgmr.msra.gmra.mxu1 %v629_v12 }
  0xd6   : > { %v352_v13 = vpop.f32.mrf.mxu0 }
  0xd8   : > { %v586_v14 = vpop.f32.mrf.mxu0 }
  0xda   : > { %v355_v15 = vpop.f32.mrf.mxu0 }
  0xdc   : > { %v587_v16 = vpop.f32.mrf.mxu0 }
  0xec   : > { %v447_v17 = vpop.f32.mrf.mxu1 }
  0xed   : > { %v448_v19 = vadd.f32 %v447_v17, %v352_v13 }
  0xee   : > { %v606_v20 = vpop.f32.mrf.mxu1 }
  0xef   : > { %v456_v21 = vadd.f32 %v454_v18, %v448_v19 }
  0xf0   : > { %v450_v22 = vpop.f32.mrf.mxu1 }
  0xf1   : > { %458 = vst.msk [vmem:[%s270_s6] sm:$0xff] %vm314_vm1, %v456_v21  ;;  %v451_v24 = vadd.f32 %v450_v22, %v355_v15 }
  0xf2   : > { %v607_v25 = vpop.f32.mrf.mxu1 }
  0xf3   : > { %v457_v26 = vadd.f32 %v455_v23, %v451_v24 }
  0xf5   : > { %459 = vst.msk [vmem:[%s270_s6 + $0x8] sm:$0xff] %vm314_vm1, %v457_v26 }
  0xf6 PF: > { %s15_s18 = sadd.s32 1, %s636_s18  }
  0xf7   : > { %p12_p4 = scmp.ge.s32.totalorder %s15_s18, 4  }
  0xf9   :  { %14 = sbr.rel (!%p12_p4) target bundleno = 1 (0x1), region = 76 }

</bundles_post_ra>
